<compile_context>
chip_gen: v7x
topology: tpu7x:2x2x1
jax: 0.10.0
libtpu: 0.0.40
codegen_flags: <defaults>
</compile_context>

<pallas_src>
import jax
import jax.numpy as jnp
from jax.experimental import pallas as pl
from jax.experimental.pallas import tpu as pltpu


def _round_up(x, m):
    return ((x + m - 1) // m) * m


def mlp_kernel(ids_ref, expand_ref, tok_ref, w1_ref, b1_ref, w2_ref, b2_ref,
               out_ref):
    # ids: (TB, L) int32.  Token values are < V (=64 here) so they are exact in
    # bf16 (exact up to 256; for much larger vocabs do this expansion in f32).
    ids_bf = ids_ref[...].astype(jnp.bfloat16)                       # (TB, L)

    # Replicate ids[b, l] across its V-wide segment on the MXU (free slack):
    #   ids_full[b, l*V + v] = ids[b, l]      (expand_ref is a 0/1 one-hot)
    ids_full = jnp.dot(ids_bf, expand_ref[...],
                       preferred_element_type=jnp.float32)           # (TB, LV)

    # One-hot over the fused (position, token) axis: lane j fires iff
    # ids[b, j // V] == j % V.  tok_ref holds j % V (and -1 on padded lanes),
    # precomputed once -> no per-step iota/modulo VALU passes.
    onehot = (ids_full == tok_ref[...]).astype(jnp.bfloat16)         # (TB, LV)

    # Fused embedding + fc1: one long-K MXU pass, f32 accumulate, bias, ReLU.
    h = jnp.dot(onehot, w1_ref[...],
                preferred_element_type=jnp.float32)                  # (TB, H_PAD)
    h = jnp.maximum(h + b1_ref[...], 0.0)

    # fc2 + bias, sigmoid (EUP), lane-dense bf16 store.
    y = jnp.dot(h.astype(jnp.bfloat16), w2_ref[...],
                preferred_element_type=jnp.float32)                  # (TB, OUT_PAD)
    out_ref[...] = jax.nn.sigmoid(y + b2_ref[...]).astype(out_ref.dtype)


def prepare_params(emb_table, w1, b1, w2, b2):
    """Fuse embedding into fc1, pad lane-dense, build one-hot constants.

    Call ONCE per weight update and reuse across forward calls (the fusion
    einsum / padding / bf16 casts are not re-emitted per batch).
    """
    V, D = emb_table.shape
    LD, H = w1.shape
    L = LD // D
    LV = L * V
    LVP = _round_up(LV, 128)      # no "+1 bias lane": biases are broadcast-adds
    H_PAD = _round_up(H, 128)
    OUT = w2.shape[1]
    OUT_PAD = _round_up(OUT, 128)

    # W[l*V + v, h] = sum_d emb[v, d] * w1[l*D + d, h]  (matches flatten order).
    w_fused = jnp.einsum('vd,ldh->lvh', emb_table,
                         w1.reshape(L, D, H)).reshape(LV, H)
    w1_p = jnp.zeros((LVP, H_PAD), jnp.float32).at[:LV, :H].set(w_fused)
    w2_p = jnp.zeros((H_PAD, OUT_PAD), jnp.float32).at[:H, :OUT].set(w2)
    b1_p = jnp.zeros((1, H_PAD), jnp.float32).at[0, :H].set(jnp.reshape(b1, (-1,)))
    b2_p = jnp.zeros((1, OUT_PAD), jnp.float32).at[0, :OUT].set(jnp.reshape(b2, (-1,)))

    # Resident constants for in-kernel one-hot construction:
    #   expand[l, l*V + v] = 1    ->  (ids @ expand)[b, j] = ids[b, j // V]
    #   tok[0, j]          = j % V   (-1 on padded lanes so they never fire)
    j = jnp.arange(LVP, dtype=jnp.int32)
    pos = j // V
    expand = (pos[None, :] == jnp.arange(L, dtype=jnp.int32)[:, None])
    expand = expand.astype(jnp.bfloat16)                             # (L, LVP)
    tok = jnp.where(j < LV, j - pos * V, -1).astype(jnp.float32)[None, :]

    consts = (expand, tok, w1_p.astype(jnp.bfloat16), b1_p,
              w2_p.astype(jnp.bfloat16), b2_p)
    dims = (L, LVP, H_PAD, OUT, OUT_PAD)
    return consts, dims


def mlp_forward(ids, params):
    (expand, tok, w1_p, b1_p, w2_p, b2_p), (L, LVP, H_PAD, OUT, OUT_PAD) = params
    B = ids.shape[0]

    # Batch tile: fill the MXU M dim for large batches (256-wide on v6e/v7x)
    # while keeping >=2 grid steps when the batch allows it, so the "parallel"
    # grid gives v7x megacore something to shard.  Tiny batches round to the
    # 8-sublane minimum.  (v5e's MXU is 128 wide: 128-row tiles stay optimal.)
    if B >= 512:
        TB = 256
    elif B > 128:
        TB = 128
    else:
        TB = min(128, _round_up(B, 8))
    B_pad = _round_up(B, TB)

    ids_p = jnp.zeros((B_pad, L), jnp.int32).at[:B].set(ids.astype(jnp.int32))

    def build(single_buffer_consts):
        # Constant operands never change across the batch grid -> (0, 0) index
        # maps, held resident; single-buffer them so VMEM isn't doubled.
        if single_buffer_consts:
            def const_spec(shape):
                return pl.BlockSpec(shape, lambda i: (0, 0),
                                    pipeline_mode=pl.Buffered(1))
        else:
            def const_spec(shape):
                return pl.BlockSpec(shape, lambda i: (0, 0))

        return pl.pallas_call(
            mlp_kernel,
            out_shape=jax.ShapeDtypeStruct((B_pad, OUT_PAD), jnp.bfloat16),
            grid=(B_pad // TB,),
            in_specs=[
                # Only raw ids are streamed per tile: TB*L*4 B (~4 KB at
                # TB=128) vs the old TB*LVP*4 B (~320 KB) expanded-ids stream.
                pl.BlockSpec((TB, L), lambda i: (i, 0)),
                const_spec((L, LVP)),          # expand matrix  (bf16, ~8 KB)
                const_spec((1, LVP)),          # token-index row (f32, ~2 KB)
                const_spec((LVP, H_PAD)),      # fused emb+fc1 weight (bf16)
                const_spec((1, H_PAD)),        # b1
                const_spec((H_PAD, OUT_PAD)),  # fc2 weight (bf16)
                const_spec((1, OUT_PAD)),      # b2
            ],
            out_specs=pl.BlockSpec((TB, OUT_PAD), lambda i: (i, 0)),
            # Resident footprint here is ~0.2 MiB.  NOTE (v7x / large vocab):
            # at realistic vocab sizes the fused (L*V, H_PAD) weight no longer
            # fits 64 MiB VMEM; in that regime tile LVP with a K-axis grid and
            # an f32 accumulator scratch (pl.when init/finalize) instead of
            # holding it resident, and re-derive vmem_limit_bytes.
            compiler_params=pltpu.CompilerParams(
                dimension_semantics=("parallel",),
                vmem_limit_bytes=16 * 1024 * 1024),
        )

    args = (ids_p, expand, tok, w1_p, b1_p, w2_p, b2_p)
    try:
        out = build(single_buffer_consts=True)(*args)
    except Exception:
        # Fallback if this Pallas version lacks BlockSpec.pipeline_mode /
        # Buffered(1): default double-buffering, identical results.
        out = build(single_buffer_consts=False)(*args)

    return out[:B, :OUT]


if __name__ == "__main__":
    # Shapes consistent with the module's forward:
    #   vocab_size=64, input_dim=16, LENGTH=8, hidden_dim=32, batch=2
    B, L, V, D, H = 2, 8, 64, 16, 32

    key = jax.random.PRNGKey(0)
    k_ids, k_emb, k_w1, k_b1, k_w2, k_b2 = jax.random.split(key, 6)

    ids = jax.random.randint(k_ids, (B, L), 0, V, dtype=jnp.int32)

    emb_table = 0.1 * jax.random.normal(k_emb, (V, D), dtype=jnp.float32)
    emb_table = emb_table.at[0].set(0.0)   # freshly-initialized padding_idx=0 row

    # PyTorch Linear stores weight as (out, in); pre-transposed to (in, out).
    w1 = 0.1 * jax.random.normal(k_w1, (L * D, H), dtype=jnp.float32)
    b1 = 0.1 * jax.random.normal(k_b1, (1, H), dtype=jnp.float32)
    w2 = 0.1 * jax.random.normal(k_w2, (H, 2), dtype=jnp.float32)
    b2 = 0.1 * jax.random.normal(k_b2, (1, 2), dtype=jnp.float32)

    # Weight prep runs once per weight update (cached), not per forward call.
    params = prepare_params(emb_table, w1, b1, w2, b2)

    out = mlp_forward(ids, params)
    out = jax.block_until_ready(out)

    # Pure-JAX f32 reference.  bf16 MXU operands + bf16 output quantization
    # (<~2e-3 near 1.0) => compare at 5e-3.
    emb = jnp.take(emb_table, ids, axis=0).reshape(B, L * D)
    ref = jax.nn.sigmoid(jnp.maximum(emb @ w1 + b1, 0.0) @ w2 + b2)
    assert out.shape == (B, 2)
    assert jnp.allclose(out.astype(jnp.float32), ref, atol=5e-3, rtol=5e-3), (out, ref)

    print("KERNEL_OK")
</pallas_src>

<mosaic_0001>
module attributes {stable_mosaic.version = 11 : i64} {
  func.func @mlp_kernel(%arg0: i32, %arg1: memref<8x8xi32, #tpu.memory_space<vmem>>, %arg2: memref<8x512xbf16, #tpu.memory_space<vmem>>, %arg3: memref<1x512xf32, #tpu.memory_space<vmem>>, %arg4: memref<512x128xbf16, #tpu.memory_space<vmem>>, %arg5: memref<1x128xf32, #tpu.memory_space<vmem>>, %arg6: memref<128x128xbf16, #tpu.memory_space<vmem>>, %arg7: memref<1x128xf32, #tpu.memory_space<vmem>>, %arg8: memref<8x128xbf16, #tpu.memory_space<vmem>>) attributes {dimension_semantics = [#tpu.dimension_semantics<parallel>], iteration_bounds = array<i64: 1>, scalar_prefetch = 0 : i64, scratch_operands = 0 : i64, tpu.core_type = #tpu.core_type<tc>, window_params = [{transform_indices = @transform_0, window_bounds = array<i64: 8, 8>}, {pipeline_mode = #tpu.pipeline_mode<synchronous>, transform_indices = @transform_1, window_bounds = array<i64: 8, 512>}, {pipeline_mode = #tpu.pipeline_mode<synchronous>, transform_indices = @transform_2, window_bounds = array<i64: 1, 512>}, {pipeline_mode = #tpu.pipeline_mode<synchronous>, transform_indices = @transform_3, window_bounds = array<i64: 512, 128>}, {pipeline_mode = #tpu.pipeline_mode<synchronous>, transform_indices = @transform_4, window_bounds = array<i64: 1, 128>}, {pipeline_mode = #tpu.pipeline_mode<synchronous>, transform_indices = @transform_5, window_bounds = array<i64: 128, 128>}, {pipeline_mode = #tpu.pipeline_mode<synchronous>, transform_indices = @transform_6, window_bounds = array<i64: 1, 128>}, {transform_indices = @transform_7, window_bounds = array<i64: 8, 128>}]} {
    %c0 = arith.constant 0 : index
    %c0_0 = arith.constant 0 : index
    %0 = vector.load %arg1[%c0, %c0_0] : memref<8x8xi32, #tpu.memory_space<vmem>>, vector<8x8xi32>
    %1 = arith.sitofp %0 : vector<8x8xi32> to vector<8x8xbf16>
    %c0_1 = arith.constant 0 : index
    %c0_2 = arith.constant 0 : index
    %2 = vector.load %arg2[%c0_1, %c0_2] : memref<8x512xbf16, #tpu.memory_space<vmem>>, vector<8x512xbf16>
    %cst = arith.constant dense<0.000000e+00> : vector<8x512xf32>
    %3 = tpu.matmul %1, %2, %cst {dimension_numbers = #tpu.dot_dimension_numbers<[1], [0], [0], [1], [0, 0, 1, 1], [], []>} : vector<8x8xbf16>, vector<8x512xbf16>, vector<8x512xf32> -> vector<8x512xf32>
    %c0_3 = arith.constant 0 : index
    %c0_4 = arith.constant 0 : index
    %4 = vector.load %arg3[%c0_3, %c0_4] : memref<1x512xf32, #tpu.memory_space<vmem>>, vector<1x512xf32>
    %5 = vector.broadcast %4 : vector<1x512xf32> to vector<8x512xf32>
    %6 = arith.cmpf oeq, %3, %5 : vector<8x512xf32>
    %7 = arith.extui %6 : vector<8x512xi1> to vector<8x512xi32>
    %8 = arith.sitofp %7 : vector<8x512xi32> to vector<8x512xf32>
    %9 = arith.truncf %8 : vector<8x512xf32> to vector<8x512xbf16>
    %c0_5 = arith.constant 0 : index
    %c0_6 = arith.constant 0 : index
    %10 = vector.load %arg4[%c0_5, %c0_6] : memref<512x128xbf16, #tpu.memory_space<vmem>>, vector<512x128xbf16>
    %cst_7 = arith.constant dense<0.000000e+00> : vector<8x128xf32>
    %11 = tpu.matmul %9, %10, %cst_7 {dimension_numbers = #tpu.dot_dimension_numbers<[1], [0], [0], [1], [0, 0, 1, 1], [], []>} : vector<8x512xbf16>, vector<512x128xbf16>, vector<8x128xf32> -> vector<8x128xf32>
    %c0_8 = arith.constant 0 : index
    %c0_9 = arith.constant 0 : index
    %12 = vector.load %arg5[%c0_8, %c0_9] : memref<1x128xf32, #tpu.memory_space<vmem>>, vector<1x128xf32>
    %13 = vector.broadcast %12 : vector<1x128xf32> to vector<8x128xf32>
    %14 = arith.addf %11, %13 : vector<8x128xf32>
    %cst_10 = arith.constant 0.000000e+00 : f32
    %15 = vector.broadcast %cst_10 : f32 to vector<8x128xf32>
    %16 = arith.maximumf %14, %15 : vector<8x128xf32>
    %17 = arith.truncf %16 : vector<8x128xf32> to vector<8x128xbf16>
    %c0_11 = arith.constant 0 : index
    %c0_12 = arith.constant 0 : index
    %18 = vector.load %arg6[%c0_11, %c0_12] : memref<128x128xbf16, #tpu.memory_space<vmem>>, vector<128x128xbf16>
    %cst_13 = arith.constant dense<0.000000e+00> : vector<8x128xf32>
    %19 = tpu.matmul %17, %18, %cst_13 {dimension_numbers = #tpu.dot_dimension_numbers<[1], [0], [0], [1], [0, 0, 1, 1], [], []>} : vector<8x128xbf16>, vector<128x128xbf16>, vector<8x128xf32> -> vector<8x128xf32>
    %c0_14 = arith.constant 0 : index
    %c0_15 = arith.constant 0 : index
    %20 = vector.load %arg7[%c0_14, %c0_15] : memref<1x128xf32, #tpu.memory_space<vmem>>, vector<1x128xf32>
    %21 = vector.broadcast %20 : vector<1x128xf32> to vector<8x128xf32>
    %22 = arith.addf %19, %21 : vector<8x128xf32>
    %23 = arith.negf %22 : vector<8x128xf32>
    %24 = math.exp %23 : vector<8x128xf32>
    %cst_16 = arith.constant 1.000000e+00 : f32
    %25 = vector.broadcast %cst_16 : f32 to vector<8x128xf32>
    %26 = arith.addf %25, %24 : vector<8x128xf32>
    %27 = arith.divf %25, %26 : vector<8x128xf32>
    %28 = arith.truncf %27 : vector<8x128xf32> to vector<8x128xbf16>
    %c0_17 = arith.constant 0 : index
    %c0_18 = arith.constant 0 : index
    %29 = vector.load %arg8[%c0_17, %c0_18] : memref<8x128xbf16, #tpu.memory_space<vmem>>, vector<8x128xbf16>
    tpu.vector_store %arg8[%c0_17, %c0_18], %28 {strides = array<i32>} : memref<8x128xbf16, #tpu.memory_space<vmem>>, vector<8x128xbf16>,
    return
  }
  func.func @transform_0(%arg0: i32) -> (i32, i32) {
    %c0_i32 = arith.constant 0 : i32
    %c0_i32_0 = arith.constant 0 : i32
    return %arg0, %c0_i32 : i32, i32
  }
  func.func @transform_1(%arg0: i32) -> (i32, i32) {
    %c0_i32 = arith.constant 0 : i32
    %c0_i32_0 = arith.constant 0 : i32
    %c0_i32_1 = arith.constant 0 : i32
    return %c0_i32, %c0_i32_0 : i32, i32
  }
  func.func @transform_2(%arg0: i32) -> (i32, i32) {
    %c0_i32 = arith.constant 0 : i32
    %c0_i32_0 = arith.constant 0 : i32
    %c0_i32_1 = arith.constant 0 : i32
    return %c0_i32, %c0_i32_0 : i32, i32
  }
  func.func @transform_3(%arg0: i32) -> (i32, i32) {
    %c0_i32 = arith.constant 0 : i32
    %c0_i32_0 = arith.constant 0 : i32
    %c0_i32_1 = arith.constant 0 : i32
    return %c0_i32, %c0_i32_0 : i32, i32
  }
  func.func @transform_4(%arg0: i32) -> (i32, i32) {
    %c0_i32 = arith.constant 0 : i32
    %c0_i32_0 = arith.constant 0 : i32
    %c0_i32_1 = arith.constant 0 : i32
    return %c0_i32, %c0_i32_0 : i32, i32
  }
  func.func @transform_5(%arg0: i32) -> (i32, i32) {
    %c0_i32 = arith.constant 0 : i32
    %c0_i32_0 = arith.constant 0 : i32
    %c0_i32_1 = arith.constant 0 : i32
    return %c0_i32, %c0_i32_0 : i32, i32
  }
  func.func @transform_6(%arg0: i32) -> (i32, i32) {
    %c0_i32 = arith.constant 0 : i32
    %c0_i32_0 = arith.constant 0 : i32
    %c0_i32_1 = arith.constant 0 : i32
    return %c0_i32, %c0_i32_0 : i32, i32
  }
  func.func @transform_7(%arg0: i32) -> (i32, i32) {
    %c0_i32 = arith.constant 0 : i32
    %c0_i32_0 = arith.constant 0 : i32
    return %arg0, %c0_i32 : i32, i32
  }
}

module attributes {stable_mosaic.version = 11 : i64} {
  func.func @mlp_kernel(%arg0: i32, %arg1: memref<8x8xi32, #tpu.memory_space<vmem>>, %arg2: memref<8x512xbf16, #tpu.memory_space<vmem>>, %arg3: memref<1x512xf32, #tpu.memory_space<vmem>>, %arg4: memref<512x128xbf16, #tpu.memory_space<vmem>>, %arg5: memref<1x128xf32, #tpu.memory_space<vmem>>, %arg6: memref<128x128xbf16, #tpu.memory_space<vmem>>, %arg7: memref<1x128xf32, #tpu.memory_space<vmem>>, %arg8: memref<8x128xbf16, #tpu.memory_space<vmem>>) attributes {dimension_semantics = [#tpu.dimension_semantics<parallel>], iteration_bounds = array<i64: 1>, scalar_prefetch = 0 : i64, scratch_operands = 0 : i64, tpu.core_type = #tpu.core_type<tc>, window_params = [{transform_indices = @transform_0, window_bounds = array<i64: 8, 8>}, {pipeline_mode = #tpu.pipeline_mode<synchronous>, transform_indices = @transform_1, window_bounds = array<i64: 8, 512>}, {pipeline_mode = #tpu.pipeline_mode<synchronous>, transform_indices = @transform_2, window_bounds = array<i64: 1, 512>}, {pipeline_mode = #tpu.pipeline_mode<synchronous>, transform_indices = @transform_3, window_bounds = array<i64: 512, 128>}, {pipeline_mode = #tpu.pipeline_mode<synchronous>, transform_indices = @transform_4, window_bounds = array<i64: 1, 128>}, {pipeline_mode = #tpu.pipeline_mode<synchronous>, transform_indices = @transform_5, window_bounds = array<i64: 128, 128>}, {pipeline_mode = #tpu.pipeline_mode<synchronous>, transform_indices = @transform_6, window_bounds = array<i64: 1, 128>}, {transform_indices = @transform_7, window_bounds = array<i64: 8, 128>}]} {
    %c0 = arith.constant 0 : index
    %c0_0 = arith.constant 0 : index
    %0 = vector.load %arg1[%c0, %c0_0] : memref<8x8xi32, #tpu.memory_space<vmem>>, vector<8x8xi32>
    %1 = arith.sitofp %0 : vector<8x8xi32> to vector<8x8xbf16>
    %c0_1 = arith.constant 0 : index
    %c0_2 = arith.constant 0 : index
    %2 = vector.load %arg2[%c0_1, %c0_2] : memref<8x512xbf16, #tpu.memory_space<vmem>>, vector<8x512xbf16>
    %cst = arith.constant dense<0.000000e+00> : vector<8x512xf32>
    %3 = tpu.matmul %1, %2, %cst {dimension_numbers = #tpu.dot_dimension_numbers<[1], [0], [0], [1], [0, 0, 1, 1], [], []>} : vector<8x8xbf16>, vector<8x512xbf16>, vector<8x512xf32> -> vector<8x512xf32>
    %c0_3 = arith.constant 0 : index
    %c0_4 = arith.constant 0 : index
    %4 = vector.load %arg3[%c0_3, %c0_4] : memref<1x512xf32, #tpu.memory_space<vmem>>, vector<1x512xf32>
    %5 = vector.broadcast %4 : vector<1x512xf32> to vector<8x512xf32>
    %6 = arith.cmpf oeq, %3, %5 : vector<8x512xf32>
    %7 = arith.extui %6 : vector<8x512xi1> to vector<8x512xi32>
    %8 = arith.sitofp %7 : vector<8x512xi32> to vector<8x512xf32>
    %9 = arith.truncf %8 : vector<8x512xf32> to vector<8x512xbf16>
    %c0_5 = arith.constant 0 : index
    %c0_6 = arith.constant 0 : index
    %10 = vector.load %arg4[%c0_5, %c0_6] : memref<512x128xbf16, #tpu.memory_space<vmem>>, vector<512x128xbf16>
    %cst_7 = arith.constant dense<0.000000e+00> : vector<8x128xf32>
    %11 = tpu.matmul %9, %10, %cst_7 {dimension_numbers = #tpu.dot_dimension_numbers<[1], [0], [0], [1], [0, 0, 1, 1], [], []>} : vector<8x512xbf16>, vector<512x128xbf16>, vector<8x128xf32> -> vector<8x128xf32>
    %c0_8 = arith.constant 0 : index
    %c0_9 = arith.constant 0 : index
    %12 = vector.load %arg5[%c0_8, %c0_9] : memref<1x128xf32, #tpu.memory_space<vmem>>, vector<1x128xf32>
    %13 = vector.broadcast %12 : vector<1x128xf32> to vector<8x128xf32>
    %14 = arith.addf %11, %13 : vector<8x128xf32>
    %cst_10 = arith.constant 0.000000e+00 : f32
    %15 = vector.broadcast %cst_10 : f32 to vector<8x128xf32>
    %16 = arith.maximumf %14, %15 : vector<8x128xf32>
    %17 = arith.truncf %16 : vector<8x128xf32> to vector<8x128xbf16>
    %c0_11 = arith.constant 0 : index
    %c0_12 = arith.constant 0 : index
    %18 = vector.load %arg6[%c0_11, %c0_12] : memref<128x128xbf16, #tpu.memory_space<vmem>>, vector<128x128xbf16>
    %cst_13 = arith.constant dense<0.000000e+00> : vector<8x128xf32>
    %19 = tpu.matmul %17, %18, %cst_13 {dimension_numbers = #tpu.dot_dimension_numbers<[1], [0], [0], [1], [0, 0, 1, 1], [], []>} : vector<8x128xbf16>, vector<128x128xbf16>, vector<8x128xf32> -> vector<8x128xf32>
    %c0_14 = arith.constant 0 : index
    %c0_15 = arith.constant 0 : index
    %20 = vector.load %arg7[%c0_14, %c0_15] : memref<1x128xf32, #tpu.memory_space<vmem>>, vector<1x128xf32>
    %21 = vector.broadcast %20 : vector<1x128xf32> to vector<8x128xf32>
    %22 = arith.addf %19, %21 : vector<8x128xf32>
    %23 = arith.negf %22 : vector<8x128xf32>
    %24 = math.exp %23 : vector<8x128xf32>
    %cst_16 = arith.constant 1.000000e+00 : f32
    %25 = vector.broadcast %cst_16 : f32 to vector<8x128xf32>
    %26 = arith.addf %25, %24 : vector<8x128xf32>
    %27 = arith.divf %25, %26 : vector<8x128xf32>
    %28 = arith.truncf %27 : vector<8x128xf32> to vector<8x128xbf16>
    %c0_17 = arith.constant 0 : index
    %c0_18 = arith.constant 0 : index
    %29 = vector.load %arg8[%c0_17, %c0_18] : memref<8x128xbf16, #tpu.memory_space<vmem>>, vector<8x128xbf16>
    tpu.vector_store %arg8[%c0_17, %c0_18], %28 {strides = array<i32>} : memref<8x128xbf16, #tpu.memory_space<vmem>>, vector<8x128xbf16>,
    return
  }
  func.func @transform_0(%arg0: i32) -> (i32, i32) {
    %c0_i32 = arith.constant 0 : i32
    %c0_i32_0 = arith.constant 0 : i32
    return %arg0, %c0_i32 : i32, i32
  }
  func.func @transform_1(%arg0: i32) -> (i32, i32) {
    %c0_i32 = arith.constant 0 : i32
    %c0_i32_0 = arith.constant 0 : i32
    %c0_i32_1 = arith.constant 0 : i32
    return %c0_i32, %c0_i32_0 : i32, i32
  }
  func.func @transform_2(%arg0: i32) -> (i32, i32) {
    %c0_i32 = arith.constant 0 : i32
    %c0_i32_0 = arith.constant 0 : i32
    %c0_i32_1 = arith.constant 0 : i32
    return %c0_i32, %c0_i32_0 : i32, i32
  }
  func.func @transform_3(%arg0: i32) -> (i32, i32) {
    %c0_i32 = arith.constant 0 : i32
    %c0_i32_0 = arith.constant 0 : i32
    %c0_i32_1 = arith.constant 0 : i32
    return %c0_i32, %c0_i32_0 : i32, i32
  }
  func.func @transform_4(%arg0: i32) -> (i32, i32) {
    %c0_i32 = arith.constant 0 : i32
    %c0_i32_0 = arith.constant 0 : i32
    %c0_i32_1 = arith.constant 0 : i32
    return %c0_i32, %c0_i32_0 : i32, i32
  }
  func.func @transform_5(%arg0: i32) -> (i32, i32) {
    %c0_i32 = arith.constant 0 : i32
    %c0_i32_0 = arith.constant 0 : i32
    %c0_i32_1 = arith.constant 0 : i32
    return %c0_i32, %c0_i32_0 : i32, i32
  }
  func.func @transform_6(%arg0: i32) -> (i32, i32) {
    %c0_i32 = arith.constant 0 : i32
    %c0_i32_0 = arith.constant 0 : i32
    %c0_i32_1 = arith.constant 0 : i32
    return %c0_i32, %c0_i32_0 : i32, i32
  }
  func.func @transform_7(%arg0: i32) -> (i32, i32) {
    %c0_i32 = arith.constant 0 : i32
    %c0_i32_0 = arith.constant 0 : i32
    return %arg0, %c0_i32 : i32, i32
  }
}

</mosaic_0001>

<bundles_post_ra>
// kernel: tpu_custom_call.1
= control target key start
LH: loop header
LB: loop body
LE: loop exit
PB: predicated region body
PF: predicated region fallthrough
CT: control target
= control target key end

     0   :  { %12 = vsyncpa [#allocation3], 0  ;;  %s1151_s0 = inlined_call_operand.hbm [shape: s32[8,8], index: 0, kind: input, shape index: {}]   ;;  %s1152_s1 = inlined_call_operand.hbm [shape: bf16[8,512], index: 1, kind: input, shape index: {}]   ;;  %s1153_s2 = inlined_call_operand.vmem [shape: f32[1,512], index: 2, kind: input, shape index: {}]   ;;  %s1154_s3 = inlined_call_operand.hbm [shape: bf16[512,128], index: 3, kind: input, shape index: {}]   ;;  %s1155_s4 = inlined_call_operand.vmem [shape: f32[1,128], index: 4, kind: input, shape index: {}]   ;;  %s1156_s5 = inlined_call_operand.hbm [shape: bf16[128,128], index: 5, kind: input, shape index: {}]   ;;  %s1157_s6 = inlined_call_operand.vmem [shape: f32[1,128], index: 6, kind: input, shape index: {}]   ;;  %s1158_s7 = inlined_call_operand.hbm [shape: bf16[8,128], index: 7, kind: output, shape index: {}]  }
   0x1   :  { %13 = vsyncpa [#allocation6], 0 }
   0x2   :  { %14 = vsyncpa [#allocation9], 0 }
   0x3   :  { %15 = vsyncpa [#allocation4], 0  ;;  %s1025_s24 = smov [#allocation5]   ;;  %s1026_s26 = smov [#allocation2]  }
   0x4   :  { %s32_s25 = sshll.u32 %s1025_s24, 4  ;;  %s22_s27 = sshll.u32 %s1026_s26, 4  ;;  %s33_s25 = int_to_ptr.vmem [resolvable:$true] %s32_s25  ;;  %s23_s27 = int_to_ptr.vmem [resolvable:$true] %s22_s27 }
   0x5   :  { %s907_s30 = scalar_lea.hbm %s1152_s1, 256 }
   0x6   :  { %p908_p0 = scmp.ne.s32.totalorder %s1152_s1, %s907_s30  ;;  %p911_p1 = scmp.lt.u32.totalorder %s907_s30, %s1152_s1 }
   0x8   :  { %p913_p2 = pnand %p911_p1, %p908_p0 }
   0xa   :  { %916 = shalt.err (!%p913_p2)
}
   0xb   :  { %s917_s12 = scalar_lea.vmem %s33_s25, 256  ;;  %p922_p4 = scmp.lt.s32.totalorder %s33_s25, %s33_s25 }
   0xc   :  { %p918_p3 = scmp.ne.s32.totalorder %s33_s25, %s917_s12  ;;  %p923_p5 = scmp.lt.s32.totalorder %s917_s12, %s917_s12 }
   0xe   :  { %p924_p6 = por %p923_p5, %p922_p4 }
  0x10   :  { %p925_p7 = pnand %p924_p6, %p918_p3 }
  0x12   :  { %928 = shalt.err (!%p925_p7)
}
  0x13   :  { %35 = dma.hbm_to_vmem [thread:$0]  %s1152_s1, 256, %s33_s25, [#allocation6]  }
  0x14   :  { %s929_s17 = scalar_lea.hbm %s1151_s0, 128 }
  0x15   :  { %p930_p8 = scmp.ne.s32.totalorder %s1151_s0, %s929_s17  ;;  %p933_p9 = scmp.lt.u32.totalorder %s929_s17, %s1151_s0 }
  0x17   :  { %p935_p10 = pnand %p933_p9, %p930_p8 }
  0x19   :  { %938 = shalt.err (!%p935_p10)
}
  0x1a   :  { %s939_s22 = scalar_lea.vmem %s23_s27, 128  ;;  %p944_p12 = scmp.lt.s32.totalorder %s23_s27, %s23_s27 }
  0x1b   :  { %p940_p11 = scmp.ne.s32.totalorder %s23_s27, %s939_s22  ;;  %p945_p13 = scmp.lt.s32.totalorder %s939_s22, %s939_s22 }
  0x1d   :  { %p946_p0 = por %p945_p13, %p944_p12 }
  0x1f   :  { %p947_p1 = pnand %p946_p0, %p940_p11 }
  0x21   :  { %950 = shalt.err (!%p947_p1)
}
  0x22   :  { %25 = dma.hbm_to_vmem [thread:$0]  %s1151_s0, 128, %s23_s27, [#allocation3]  }
  0x23   :  { %s1027_s24 = smov [#allocation7]   ;;  %s951_s29 = scalar_lea.hbm %s1154_s3, 4096 }
  0x24   :  { %s43_s25 = sshll.u32 %s1027_s24, 4  ;;  %p952_p2 = scmp.ne.s32.totalorder %s1154_s3, %s951_s29  ;;  %s44_s25 = int_to_ptr.vmem [resolvable:$true] %s43_s25 }
  0x25   :  { %p955_p3 = scmp.lt.u32.totalorder %s951_s29, %s1154_s3 }
  0x27   :  { %p957_p4 = pnand %p955_p3, %p952_p2 }
  0x29   :  { %960 = shalt.err (!%p957_p4)
}
  0x2a   :  { %s961_s11 = scalar_lea.vmem %s44_s25, 4096  ;;  %p966_p6 = scmp.lt.s32.totalorder %s44_s25, %s44_s25 }
  0x2b   :  { %p962_p5 = scmp.ne.s32.totalorder %s44_s25, %s961_s11  ;;  %p967_p7 = scmp.lt.s32.totalorder %s961_s11, %s961_s11 }
  0x2d   :  { %p968_p8 = por %p967_p7, %p966_p6 }
  0x2f   :  { %p969_p9 = pnand %p968_p8, %p962_p5 }
  0x31   :  { %972 = shalt.err (!%p969_p9)
}
  0x32   :  { %s1028_s0 = smov 64   ;;  %s1029_s27 = smov 4  }
  0x33   :  { %49 = dma.hbm_to_vmem [thread:$0]  %s1154_s3, 4096, %s44_s25, [#allocation6], %s1028_s0, %s1028_s0, %s1029_s27  }
  0x34   :  { %s1030_s14 = smov [#allocation8]   ;;  %s973_s18 = scalar_lea.hbm %s1156_s5, 1024 }
  0x35   :  { %s57_s15 = sshll.u32 %s1030_s14, 4  ;;  %p974_p10 = scmp.ne.s32.totalorder %s1156_s5, %s973_s18  ;;  %s58_s15 = int_to_ptr.vmem [resolvable:$true] %s57_s15 }
  0x36   :  { %p977_p11 = scmp.lt.u32.totalorder %s973_s18, %s1156_s5 }
  0x38   :  { %p979_p12 = pnand %p977_p11, %p974_p10 }
  0x3a   :  { %982 = shalt.err (!%p979_p12)
}
  0x3b   :  { %s983_s1 = scalar_lea.vmem %s58_s15, 1024  ;;  %p988_p0 = scmp.lt.s32.totalorder %s58_s15, %s58_s15 }
  0x3c   :  { %p984_p13 = scmp.ne.s32.totalorder %s58_s15, %s983_s1  ;;  %p989_p1 = scmp.lt.s32.totalorder %s983_s1, %s983_s1 }
  0x3e   :  { %p990_p2 = por %p989_p1, %p988_p0 }
  0x40   :  { %p991_p3 = pnand %p990_p2, %p984_p13 }
  0x42   :  { %994 = shalt.err (!%p991_p3)
}
  0x43   :  { %63 = dma.hbm_to_vmem [thread:$0]  %s1156_s5, 1024, %s58_s15, [#allocation9], %s1028_s0, %s1028_s0, %s1029_s27  }
  0x44   :  { %1017 = dma.done.wait [#allocation3], 128  }
  0x45   :  { %1018 = vsyncadd [#allocation3], 4294967168 }
  0x46   :  { %1019 = dma.done.wait [#allocation6], 4352  }
  0x47   :  { %1020 = vsyncadd [#allocation6], 4294962944 }
  0x48   :  { %1021 = dma.done.wait [#allocation9], 1024  }
  0x49   :  { %1022 = vsyncadd [#allocation9], 4294966272  ;;  %v1031_v0 = vmov 0   ;;  %v82_v1 = vld [vmem:[#allocation5] sm:$0xff]  ;;  %vm98_vm0 = vcmask 1043456   ;;  %v79_v2 = vld [vmem:[#allocation2] sm:$0xff]  ;;  %v195_v45 = vlaneseq }
  0x4a   :  { %143 = vmatprep.mubr.bf16.mxu1 %v1031_v0  ;;  %v83_v3 = vld [vmem:[#allocation5 + $0x8] sm:$0xff]  ;;  %v713_v4 = vcombine.high %v82_v1, %v82_v1  ;;  %v712_v5 = vcombine.low %v82_v1, %v82_v1  ;;  %v80_v6 = vcvt.s32.f32 %v79_v2  ;;  %v863_v8 = vld [vmem:[#allocation7 + $0x40] sm:$0xff]   ;;  %v865_v13 = vld [vmem:[#allocation7 + $0x48] sm:$0xff]   ;;  %vm94_vm1 = vcmask 64512  }
  0x4b   :  { %v715_v7 = vcombine.high %v83_v3, %v83_v3  ;;  %v714_v9 = vcombine.low %v83_v3, %v83_v3  ;;  %v864_v10 = vld [vmem:[#allocation7] sm:$0xff]   ;;  %775 = vmatprep.subr.bf16.mxu0 %v863_v8  ;;  %v866_v14 = vld [vmem:[#allocation7 + $0x8] sm:$0xff]   ;;  %v867_v16 = vld [vmem:[#allocation7 + $0x50] sm:$0xff]   ;;  %v1032_v44 = vmov 0.0   ;;  %v196_v46 = vshrl.u32 %v195_v45, 7 }
  0x4c   :  { %716 = vmatprep.subr.msk.bf16.mxu1 %vm98_vm0, %v713_v4  ;;  %v100_v11 = vsel %vm98_vm0, %v712_v5, 0  ;;  %v81_v12 = vpack.c.bf16 %v80_v6, %v80_v6  ;;  %776 = vmatpush3.bf16.msra.mxu0 %v864_v10  ;;  %v868_v17 = vld [vmem:[#allocation7 + $0xc0] sm:$0xff]   ;;  %v869_v18 = vld [vmem:[#allocation7 + $0x10] sm:$0xff]   ;;  %v871_v19 = vld [vmem:[#allocation7 + $0x58] sm:$0xff]   ;;  %v1033_v59 = vmov 1.0|1.0  }
  0x4d   :  { %112 = vmatpush1.bf16.msra.mxu1 %v100_v11  ;;  %v106_v15 = vsel %vm98_vm0, %v714_v9, 0  ;;  %777 = vmatprep.subr.bf16.mxu0 %v865_v13  ;;  %v870_v20 = vld [vmem:[#allocation7 + $0x80] sm:$0xff]   ;;  %v872_v21 = vld [vmem:[#allocation7 + $0xc8] sm:$0xff]   ;;  %v873_v22 = vld [vmem:[#allocation7 + $0x18] sm:$0xff]   ;;  %v197_v47 = vsub.s32 0, %v196_v46  ;;  %v201_v49 = vsub.s32 1, %v196_v46 }
  0x4e   :  { %718 = vmatprep.subr.msk.bf16.mxu1 %vm98_vm0, %v715_v7  ;;  %v875_v23 = vld [vmem:[#allocation7 + $0x60] sm:$0xff]   ;;  %v874_v24 = vld [vmem:[#allocation7 + $0x88] sm:$0xff]   ;;  %v876_v25 = vld [vmem:[#allocation7 + $0xd0] sm:$0xff]   ;;  %v205_v54 = vsub.s32 2, %v196_v46  ;;  %v209_v56 = vsub.s32 3, %v196_v46  ;;  %vm1034_vm10 = vmmov 0  }
  0x4f   :  { %v877_v26 = vld [vmem:[#allocation7 + $0x20] sm:$0xff]   ;;  %v879_v27 = vld [vmem:[#allocation7 + $0x68] sm:$0xff]   ;;  %v878_v28 = vld [vmem:[#allocation7 + $0x90] sm:$0xff]  }
  0x50   :  { %717 = vmatmul.mubr.msk.bf16.vlgmr.msra.gmra.mrb[0].mxu1 %vm94_vm1, %v81_v12  ;;  %778 = vmatpush3.bf16.msra.mxu0 %v866_v14  ;;  %v880_v29 = vld [vmem:[#allocation7 + $0xd8] sm:$0xff]   ;;  %v881_v30 = vld [vmem:[#allocation7 + $0x28] sm:$0xff]   ;;  %v883_v32 = vld [vmem:[#allocation7 + $0x70] sm:$0xff]  }
  0x51   :  { %153 = vmatpush1.bf16.msra.mxu1 %v106_v15  ;;  %184 = vmatprep.mubr.bf16.mxu1 %v1031_v0  ;;  %v882_v31 = vld [vmem:[#allocation7 + $0x98] sm:$0xff]   ;;  %v884_v33 = vld [vmem:[#allocation7 + $0xe0] sm:$0xff]   ;;  %v885_v34 = vld [vmem:[#allocation7 + $0x30] sm:$0xff]  }
  0x52   :  { %797 = vmatprep.subr.bf16.mxu1 %v868_v17  ;;  %779 = vmatprep.subr.bf16.mxu0 %v867_v16  ;;  %v886_v35 = vld [vmem:[#allocation7 + $0xa0] sm:$0xff]   ;;  %v887_v36 = vld [vmem:[#allocation7 + $0x78] sm:$0xff]   ;;  %v888_v37 = vld [vmem:[#allocation7 + $0xe8] sm:$0xff]  }
  0x53   :  { %v889_v38 = vld [vmem:[#allocation7 + $0x38] sm:$0xff]   ;;  %v890_v39 = vld [vmem:[#allocation7 + $0xa8] sm:$0xff]   ;;  %v891_v40 = vld [vmem:[#allocation7 + $0xf0] sm:$0xff]  }
  0x54   :  { %780 = vmatpush3.bf16.msra.mxu0 %v869_v18  ;;  %v892_v41 = vld [vmem:[#allocation7 + $0xb0] sm:$0xff]   ;;  %v893_v42 = vld [vmem:[#allocation7 + $0xf8] sm:$0xff]   ;;  %v193_v48 = vld [vmem:[%s1153_s2] sm:$0xf] }
  0x55   :  { %781 = vmatprep.subr.bf16.mxu0 %v871_v19  ;;  %v894_v43 = vld [vmem:[#allocation7 + $0xb8] sm:$0xff]   ;;  %v198_v50 = vrot.slane %v193_v48, %v197_v47  ;;  %v202_v51 = vrot.slane %v193_v48, %v201_v49  ;;  %v895_v57 = vld [vmem:[#allocation8] sm:$0xff]   ;;  %v206_v60 = vrot.slane %v193_v48, %v205_v54  ;;  %v210_v61 = vrot.slane %v193_v48, %v209_v56  ;;  %v896_v62 = vld [vmem:[#allocation8 + $0x8] sm:$0xff]  }
  0x56   :  { %v897_v2 = vld [vmem:[#allocation8 + $0x10] sm:$0xff]   ;;  %v898_v4 = vld [vmem:[#allocation8 + $0x18] sm:$0xff]   ;;  %v899_v5 = vld [vmem:[#allocation8 + $0x20] sm:$0xff]  }
  0x57   :  { %v900_v6 = vld [vmem:[#allocation8 + $0x28] sm:$0xff]   ;;  %v901_v7 = vld [vmem:[#allocation8 + $0x30] sm:$0xff]   ;;  %v902_v8 = vld [vmem:[#allocation8 + $0x38] sm:$0xff]  }
  0x58   :  { %719 = vmatmul.mubr.msk.bf16.vlgmr.msra.gmra.mrb[4].mxu1 %vm94_vm1, %v81_v12  ;;  %782 = vmatpush3.bf16.msra.mxu0 %v873_v22  ;;  %v724_v14 = vld [vmem:[%s1155_s4] ss:$0 sm:$0xff]  ;;  %s1035_s4 = smov [#allocation10]  }
  0x59   :  { %798 = vmatpush3.bf16.msra.mxu1 %v870_v20  ;;  %783 = vmatprep.subr.bf16.mxu0 %v875_v23  ;;  %s701_s29 = sshll.u32 %s1035_s4, 4  ;;  %s702_s29 = int_to_ptr.vmem [resolvable:$true] %s701_s29 }
  0x5a   :  { %799 = vmatprep.subr.bf16.mxu1 %v872_v21  ;;  %s995_s30 = scalar_lea.vmem %s702_s29, 64  ;;  %p1000_p5 = scmp.lt.s32.totalorder %s702_s29, %s702_s29 }
  0x5b   :  { %p996_p4 = scmp.ne.s32.totalorder %s702_s29, %s995_s30  ;;  %p1001_p6 = scmp.lt.s32.totalorder %s995_s30, %s995_s30 }
  0x5c   :  { %784 = vmatpush3.bf16.msra.mxu0 %v877_v26 }
  0x5d   :  { %800 = vmatpush3.bf16.msra.mxu1 %v874_v24  ;;  %785 = vmatprep.subr.bf16.mxu0 %v879_v27  ;;  %v765_v24 = vld [vmem:[%s1157_s6] ss:$0 sm:$0xff]  ;;  %p1002_p7 = por %p1001_p6, %p1000_p5 }
  0x5e   :  { %801 = vmatprep.subr.bf16.mxu1 %v876_v25 }
  0x5f   :  { %p1003_p8 = pnand %p1002_p7, %p996_p4 }
  0x60   :  { %786 = vmatpush3.bf16.msra.mxu0 %v881_v30 }
  0x61   :  { %802 = vmatpush3.bf16.msra.mxu1 %v878_v28  ;;  %787 = vmatprep.subr.bf16.mxu0 %v883_v32 }
  0x62   :  { %803 = vmatprep.subr.bf16.mxu1 %v880_v29 }
  0x64   :  { %788 = vmatpush3.bf16.msra.mxu0 %v885_v34 }
  0x65   :  { %804 = vmatpush3.bf16.msra.mxu1 %v882_v31  ;;  %789 = vmatprep.subr.bf16.mxu0 %v887_v36 }
  0x66   :  { %805 = vmatprep.subr.bf16.mxu1 %v884_v33 }
  0x68   :  { %790 = vmatpush3.bf16.msra.mxu0 %v889_v38 }
  0x69   :  { %806 = vmatpush3.bf16.msra.mxu1 %v886_v35  ;;  %828 = vmatprep.subr.bf16.mxu0 %v1032_v44 }
  0x6a   :  { %807 = vmatprep.subr.bf16.mxu1 %v888_v37 }
  0x6d   :  { %808 = vmatpush3.bf16.msra.mxu1 %v890_v39 }
  0x6e   :  { %809 = vmatprep.subr.bf16.mxu1 %v891_v40 }
  0x71   :  { %810 = vmatpush3.bf16.msra.mxu1 %v892_v41 }
  0x72   :  { %811 = vmatprep.subr.bf16.mxu1 %v893_v42 }
  0x75   :  { %812 = vmatpush3.bf16.msra.mxu1 %v894_v43 }
 0x123   :  { %v145_v52 = vpop.f32.mrb[0].mxu1 }
 0x124   :  { %vm215_vm2 = vcmp.eq.f32.partialorder %v145_v52, %v198_v50  ;;  %v147_v53 = vpop.f32.mrb[1].mxu1 }
 0x125   :  { %vm216_vm3 = vcmp.eq.f32.partialorder %v147_v53, %v202_v51  ;;  %v149_v55 = vpop.f32.mrb[2].mxu1  ;;  %vm759_vm5 = vmpackc.low %vm215_vm2, %vm215_vm2 }
 0x126   :  { %v150_v58 = vpop.f32.mrb[3].mxu1  ;;  %vm757_vm4 = vmpackc.low %vm216_vm3, %vm216_vm3 }
 0x127   :  { %758 = vmatprep.mubr.msk.bf16.mxu0 %vm757_vm4, %v1033_v59 }
 0x128   :  { %760 = vmatmul.mubr.msk.bf16.vlgmr.msra.gmra.mrb[0].mxu0 %vm759_vm5, %v1033_v59 }
 0x129   :  { %829 = vmatpush3.bf16.msra.mxu0 %v895_v57  ;;  %844 = vmatprep.mubr.msk.bf16.mxu0 %vm1034_vm10, %v1032_v44 }
 0x12a   :  { %830 = vmatprep.subr.bf16.mxu0 %v1032_v44 }
 0x12b   :  { %v186_v63 = vpop.f32.mrb[4].mxu1 }
 0x12c   :  { %vm217_vm6 = vcmp.eq.f32.partialorder %v186_v63, %v206_v60  ;;  %v188_v0 = vpop.f32.mrb[5].mxu1 }
 0x12d   :  { %vm218_vm7 = vcmp.eq.f32.partialorder %v188_v0, %v210_v61  ;;  %v190_v1 = vpop.f32.mrb[6].mxu1  ;;  %831 = vmatpush3.bf16.msra.mxu0 %v896_v62  ;;  %vm763_vm9 = vmpackc.low %vm217_vm6, %vm217_vm6 }
 0x12e   :  { %vm761_vm8 = vmpackc.low %vm218_vm7, %vm218_vm7  ;;  %v191_v3 = vpop.f32.mrb[7].mxu1  ;;  %832 = vmatprep.subr.bf16.mxu0 %v1032_v44 }
 0x12f   :  { %762 = vmatprep.mubr.msk.bf16.mxu1 %vm761_vm8, %v1033_v59 }
 0x130   :  { %764 = vmatmul.mubr.msk.bf16.vlgmr.msra.gmra.mrb[8].mxu1 %vm763_vm9, %v1033_v59 }
 0x131   :  { %833 = vmatpush3.bf16.msra.mxu0 %v897_v2 }
 0x132   :  { %834 = vmatprep.subr.bf16.mxu0 %v1032_v44 }
 0x135   :  { %835 = vmatpush3.bf16.msra.mxu0 %v898_v4 }
 0x136   :  { %836 = vmatprep.subr.bf16.mxu0 %v1032_v44 }
 0x139   :  { %837 = vmatpush3.bf16.msra.mxu0 %v899_v5 }
 0x13a   :  { %838 = vmatprep.subr.bf16.mxu0 %v1032_v44 }
 0x13d   :  { %839 = vmatpush3.bf16.msra.mxu0 %v900_v6 }
 0x13e   :  { %840 = vmatprep.subr.bf16.mxu0 %v1032_v44 }
 0x141   :  { %841 = vmatpush3.bf16.msra.mxu0 %v901_v7 }
 0x142   :  { %842 = vmatprep.subr.bf16.mxu0 %v1032_v44 }
 0x145   :  { %843 = vmatpush3.bf16.msra.mxu0 %v902_v8 }
 0x1fb   :  { %v791_v9 = vpop.f32.mrb[0].mxu0 }
 0x1fc   :  { %v792_v10 = vpop.f32.mrb[1].mxu0 }
 0x1fd   :  { %v793_v11 = vadd.f32 %v792_v10, %v791_v9  ;;  %v794_v12 = vpop.f32.mrb[2].mxu0 }
 0x1fe   :  { %v795_v13 = vpop.f32.mrb[3].mxu0 }
 0x1ff   :  { %v529_v17 = vadd.f32 %v793_v11, %v724_v14 }
 0x203   :  { %v813_v15 = vpop.f32.mrb[8].mxu1 }
 0x204   :  { %v814_v16 = vpop.f32.mrb[9].mxu1 }
 0x205   :  { %v815_v18 = vadd.f32 %v814_v16, %v813_v15  ;;  %v816_v19 = vpop.f32.mrb[10].mxu1 }
 0x206   :  { %v817_v20 = vpop.f32.mrb[11].mxu1 }
 0x207   :  { %v569_v21 = vadd.f32 %v815_v18, %v529_v17 }
 0x209   :  { %v574_v22 = vmax.f32 %v569_v21, 0.0 }
 0x20b   :  { %v575_v23 = vpack.c.bf16 %v574_v22, %v574_v22 }
 0x20d   :  { %845 = vmatmul.mubr.bf16.vlgmr.msra.gmra.mrb[4].mxu0 %v575_v23 }
 0x2e0   :  { %v681_v25 = vpop.f32.mrb[4].mxu0 }
 0x2e1   :  { %v682_v26 = vadd.f32 %v765_v24, %v681_v25  ;;  %v846_v27 = vpop.f32.mrb[5].mxu0 }
 0x2e2   :  { %v684_v28 = vpop.f32.mrb[6].mxu0 }
 0x2e3   :  { %v774_v29 = vmul.f32 -1.442695, %v682_v26  ;;  %v847_v30 = vpop.f32.mrb[7].mxu0 }
 0x2e5   :  { %903 = vpow2.f32 %v774_v29 }
 0x2ef   :  { %v904_v31 = vpop.eup %903 }
 0x2f0   :  { %v690_v32 = vadd.f32 1.0, %v904_v31 }
 0x2f2   :  { %905 = vrcp.f32 %v690_v32 }
 0x2fc   :  { %v906_v33 = vpop.eup %905 }
 0x2fd   :  { %v693_v34 = vpack.c.bf16 %v906_v33, %v906_v33 }
 0x2ff   :  { %694 = vst [vmem:[#allocation10] sm:$0xf] %v693_v34 }
 0x300   :  { %1006 = shalt.err (!%p1003_p8)
}
 0x301   :  { %s1007_s9 = scalar_lea.hbm %s1158_s7, 64 }
 0x302   :  { %p1008_p9 = scmp.ne.s32.totalorder %s1158_s7, %s1007_s9  ;;  %p1011_p10 = scmp.lt.u32.totalorder %s1007_s9, %s1158_s7 }
 0x304   :  { %p1013_p11 = pnand %p1011_p10, %p1008_p9 }
 0x306   :  { %1016 = shalt.err (!%p1013_p11)
}
 0x307   :  { %704 = dma.vmem_to_hbm [thread:$0]  %s702_s29, 64, %s1158_s7, [#allocation4]  }
 0x308   :  { %1023 = dma.done.wait [#allocation4], 64  }
 0x309   :  { %1024 = vsyncadd [#allocation4], 4294967232 }
 0x30a   :  { %708 = vsyncpa [#allocation3], 1 }
 0x30b   :  { %709 = vsyncpa [#allocation6], 1 }
 0x30c   :  { %710 = vsyncpa [#allocation9], 1 }
 0x30d   :  { %711 = vsyncpa [#allocation4], 1 }

// kernel: tpu_custom_call.1
= control target key start
LH: loop header
LB: loop body
LE: loop exit
PB: predicated region body
PF: predicated region fallthrough
CT: control target
= control target key end

     0   :  { %12 = vsyncpa [#allocation3], 0  ;;  %s1151_s0 = inlined_call_operand.hbm [shape: s32[8,8], index: 0, kind: input, shape index: {}]   ;;  %s1152_s1 = inlined_call_operand.hbm [shape: bf16[8,512], index: 1, kind: input, shape index: {}]   ;;  %s1153_s2 = inlined_call_operand.vmem [shape: f32[1,512], index: 2, kind: input, shape index: {}]   ;;  %s1154_s3 = inlined_call_operand.hbm [shape: bf16[512,128], index: 3, kind: input, shape index: {}]   ;;  %s1155_s4 = inlined_call_operand.vmem [shape: f32[1,128], index: 4, kind: input, shape index: {}]   ;;  %s1156_s5 = inlined_call_operand.hbm [shape: bf16[128,128], index: 5, kind: input, shape index: {}]   ;;  %s1157_s6 = inlined_call_operand.vmem [shape: f32[1,128], index: 6, kind: input, shape index: {}]   ;;  %s1158_s7 = inlined_call_operand.hbm [shape: bf16[8,128], index: 7, kind: output, shape index: {}]  }
   0x1   :  { %13 = vsyncpa [#allocation6], 0 }
   0x2   :  { %14 = vsyncpa [#allocation9], 0 }
   0x3   :  { %15 = vsyncpa [#allocation4], 0  ;;  %s1025_s24 = smov [#allocation5]   ;;  %s1026_s26 = smov [#allocation2]  }
   0x4   :  { %s32_s25 = sshll.u32 %s1025_s24, 4  ;;  %s22_s27 = sshll.u32 %s1026_s26, 4  ;;  %s33_s25 = int_to_ptr.vmem [resolvable:$true] %s32_s25  ;;  %s23_s27 = int_to_ptr.vmem [resolvable:$true] %s22_s27 }
   0x5   :  { %s907_s30 = scalar_lea.hbm %s1152_s1, 256 }
   0x6   :  { %p908_p0 = scmp.ne.s32.totalorder %s1152_s1, %s907_s30  ;;  %p911_p1 = scmp.lt.u32.totalorder %s907_s30, %s1152_s1 }
   0x8   :  { %p913_p2 = pnand %p911_p1, %p908_p0 }
   0xa   :  { %916 = shalt.err (!%p913_p2)
}
   0xb   :  { %s917_s12 = scalar_lea.vmem %s33_s25, 256  ;;  %p922_p4 = scmp.lt.s32.totalorder %s33_s25, %s33_s25 }
   0xc   :  { %p918_p3 = scmp.ne.s32.totalorder %s33_s25, %s917_s12  ;;  %p923_p5 = scmp.lt.s32.totalorder %s917_s12, %s917_s12 }
   0xe   :  { %p924_p6 = por %p923_p5, %p922_p4 }
  0x10   :  { %p925_p7 = pnand %p924_p6, %p918_p3 }
  0x12   :  { %928 = shalt.err (!%p925_p7)
}
  0x13   :  { %35 = dma.hbm_to_vmem [thread:$0]  %s1152_s1, 256, %s33_s25, [#allocation6]  }
  0x14   :  { %s929_s17 = scalar_lea.hbm %s1151_s0, 128 }
  0x15   :  { %p930_p8 = scmp.ne.s32.totalorder %s1151_s0, %s929_s17  ;;  %p933_p9 = scmp.lt.u32.totalorder %s929_s17, %s1151_s0 }
  0x17   :  { %p935_p10 = pnand %p933_p9, %p930_p8 }
  0x19   :  { %938 = shalt.err (!%p935_p10)
}
  0x1a   :  { %s939_s22 = scalar_lea.vmem %s23_s27, 128  ;;  %p944_p12 = scmp.lt.s32.totalorder %s23_s27, %s23_s27 }
  0x1b   :  { %p940_p11 = scmp.ne.s32.totalorder %s23_s27, %s939_s22  ;;  %p945_p13 = scmp.lt.s32.totalorder %s939_s22, %s939_s22 }
  0x1d   :  { %p946_p0 = por %p945_p13, %p944_p12 }
  0x1f   :  { %p947_p1 = pnand %p946_p0, %p940_p11 }
  0x21   :  { %950 = shalt.err (!%p947_p1)
}
  0x22   :  { %25 = dma.hbm_to_vmem [thread:$0]  %s1151_s0, 128, %s23_s27, [#allocation3]  }
  0x23   :  { %s1027_s24 = smov [#allocation7]   ;;  %s951_s29 = scalar_lea.hbm %s1154_s3, 4096 }
  0x24   :  { %s43_s25 = sshll.u32 %s1027_s24, 4  ;;  %p952_p2 = scmp.ne.s32.totalorder %s1154_s3, %s951_s29  ;;  %s44_s25 = int_to_ptr.vmem [resolvable:$true] %s43_s25 }
  0x25   :  { %p955_p3 = scmp.lt.u32.totalorder %s951_s29, %s1154_s3 }
  0x27   :  { %p957_p4 = pnand %p955_p3, %p952_p2 }
  0x29   :  { %960 = shalt.err (!%p957_p4)
}
  0x2a   :  { %s961_s11 = scalar_lea.vmem %s44_s25, 4096  ;;  %p966_p6 = scmp.lt.s32.totalorder %s44_s25, %s44_s25 }
  0x2b   :  { %p962_p5 = scmp.ne.s32.totalorder %s44_s25, %s961_s11  ;;  %p967_p7 = scmp.lt.s32.totalorder %s961_s11, %s961_s11 }
  0x2d   :  { %p968_p8 = por %p967_p7, %p966_p6 }
  0x2f   :  { %p969_p9 = pnand %p968_p8, %p962_p5 }
  0x31   :  { %972 = shalt.err (!%p969_p9)
}
  0x32   :  { %s1028_s0 = smov 64   ;;  %s1029_s27 = smov 4  }
  0x33   :  { %49 = dma.hbm_to_vmem [thread:$0]  %s1154_s3, 4096, %s44_s25, [#allocation6], %s1028_s0, %s1028_s0, %s1029_s27  }
  0x34   :  { %s1030_s14 = smov [#allocation8]   ;;  %s973_s18 = scalar_lea.hbm %s1156_s5, 1024 }
  0x35   :  { %s57_s15 = sshll.u32 %s1030_s14, 4  ;;  %p974_p10 = scmp.ne.s32.totalorder %s1156_s5, %s973_s18  ;;  %s58_s15 = int_to_ptr.vmem [resolvable:$true] %s57_s15 }
  0x36   :  { %p977_p11 = scmp.lt.u32.totalorder %s973_s18, %s1156_s5 }
  0x38   :  { %p979_p12 = pnand %p977_p11, %p974_p10 }
  0x3a   :  { %982 = shalt.err (!%p979_p12)
}
  0x3b   :  { %s983_s1 = scalar_lea.vmem %s58_s15, 1024  ;;  %p988_p0 = scmp.lt.s32.totalorder %s58_s15, %s58_s15 }
  0x3c   :  { %p984_p13 = scmp.ne.s32.totalorder %s58_s15, %s983_s1  ;;  %p989_p1 = scmp.lt.s32.totalorder %s983_s1, %s983_s1 }
  0x3e   :  { %p990_p2 = por %p989_p1, %p988_p0 }
  0x40   :  { %p991_p3 = pnand %p990_p2, %p984_p13 }
  0x42   :  { %994 = shalt.err (!%p991_p3)
}
  0x43   :  { %63 = dma.hbm_to_vmem [thread:$0]  %s1156_s5, 1024, %s58_s15, [#allocation9], %s1028_s0, %s1028_s0, %s1029_s27  }
  0x44   :  { %1017 = dma.done.wait [#allocation3], 128  }
  0x45   :  { %1018 = vsyncadd [#allocation3], 4294967168 }
  0x46   :  { %1019 = dma.done.wait [#allocation6], 4352  }
  0x47   :  { %1020 = vsyncadd [#allocation6], 4294962944 }
  0x48   :  { %1021 = dma.done.wait [#allocation9], 1024  }
  0x49   :  { %1022 = vsyncadd [#allocation9], 4294966272  ;;  %v1031_v0 = vmov 0   ;;  %v82_v1 = vld [vmem:[#allocation5] sm:$0xff]  ;;  %vm98_vm0 = vcmask 1043456   ;;  %v79_v2 = vld [vmem:[#allocation2] sm:$0xff]  ;;  %v195_v45 = vlaneseq }
  0x4a   :  { %143 = vmatprep.mubr.bf16.mxu1 %v1031_v0  ;;  %v83_v3 = vld [vmem:[#allocation5 + $0x8] sm:$0xff]  ;;  %v713_v4 = vcombine.high %v82_v1, %v82_v1  ;;  %v712_v5 = vcombine.low %v82_v1, %v82_v1  ;;  %v80_v6 = vcvt.s32.f32 %v79_v2  ;;  %v863_v8 = vld [vmem:[#allocation7 + $0x40] sm:$0xff]   ;;  %v865_v13 = vld [vmem:[#allocation7 + $0x48] sm:$0xff]   ;;  %vm94_vm1 = vcmask 64512  }
  0x4b   :  { %v715_v7 = vcombine.high %v83_v3, %v83_v3  ;;  %v714_v9 = vcombine.low %v83_v3, %v83_v3  ;;  %v864_v10 = vld [vmem:[#allocation7] sm:$0xff]   ;;  %775 = vmatprep.subr.bf16.mxu0 %v863_v8  ;;  %v866_v14 = vld [vmem:[#allocation7 + $0x8] sm:$0xff]   ;;  %v867_v16 = vld [vmem:[#allocation7 + $0x50] sm:$0xff]   ;;  %v1032_v44 = vmov 0.0   ;;  %v196_v46 = vshrl.u32 %v195_v45, 7 }
  0x4c   :  { %716 = vmatprep.subr.msk.bf16.mxu1 %vm98_vm0, %v713_v4  ;;  %v100_v11 = vsel %vm98_vm0, %v712_v5, 0  ;;  %v81_v12 = vpack.c.bf16 %v80_v6, %v80_v6  ;;  %776 = vmatpush3.bf16.msra.mxu0 %v864_v10  ;;  %v868_v17 = vld [vmem:[#allocation7 + $0xc0] sm:$0xff]   ;;  %v869_v18 = vld [vmem:[#allocation7 + $0x10] sm:$0xff]   ;;  %v871_v19 = vld [vmem:[#allocation7 + $0x58] sm:$0xff]   ;;  %v1033_v59 = vmov 1.0|1.0  }
  0x4d   :  { %112 = vmatpush1.bf16.msra.mxu1 %v100_v11  ;;  %v106_v15 = vsel %vm98_vm0, %v714_v9, 0  ;;  %777 = vmatprep.subr.bf16.mxu0 %v865_v13  ;;  %v870_v20 = vld [vmem:[#allocation7 + $0x80] sm:$0xff]   ;;  %v872_v21 = vld [vmem:[#allocation7 + $0xc8] sm:$0xff]   ;;  %v873_v22 = vld [vmem:[#allocation7 + $0x18] sm:$0xff]   ;;  %v197_v47 = vsub.s32 0, %v196_v46  ;;  %v201_v49 = vsub.s32 1, %v196_v46 }
  0x4e   :  { %718 = vmatprep.subr.msk.bf16.mxu1 %vm98_vm0, %v715_v7  ;;  %v875_v23 = vld [vmem:[#allocation7 + $0x60] sm:$0xff]   ;;  %v874_v24 = vld [vmem:[#allocation7 + $0x88] sm:$0xff]   ;;  %v876_v25 = vld [vmem:[#allocation7 + $0xd0] sm:$0xff]   ;;  %v205_v54 = vsub.s32 2, %v196_v46  ;;  %v209_v56 = vsub.s32 3, %v196_v46  ;;  %vm1034_vm10 = vmmov 0  }
  0x4f   :  { %v877_v26 = vld [vmem:[#allocation7 + $0x20] sm:$0xff]   ;;  %v879_v27 = vld [vmem:[#allocation7 + $0x68] sm:$0xff]   ;;  %v878_v28 = vld [vmem:[#allocation7 + $0x90] sm:$0xff]  }
  0x50   :  { %717 = vmatmul.mubr.msk.bf16.vlgmr.msra.gmra.mrb[0].mxu1 %vm94_vm1, %v81_v12  ;;  %778 = vmatpush3.bf16.msra.mxu0 %v866_v14  ;;  %v880_v29 = vld [vmem:[#allocation7 + $0xd8] sm:$0xff]   ;;  %v881_v30 = vld [vmem:[#allocation7 + $0x28] sm:$0xff]   ;;  %v883_v32 = vld [vmem:[#allocation7 + $0x70] sm:$0xff]  }
  0x51   :  { %153 = vmatpush1.bf16.msra.mxu1 %v106_v15  ;;  %184 = vmatprep.mubr.bf16.mxu1 %v1031_v0  ;;  %v882_v31 = vld [vmem:[#allocation7 + $0x98] sm:$0xff]   ;;  %v884_v33 = vld [vmem:[#allocation7 + $0xe0] sm:$0xff]   ;;  %v885_v34 = vld [vmem:[#allocation7 + $0x30] sm:$0xff]  }
  0x52   :  { %797 = vmatprep.subr.bf16.mxu1 %v868_v17  ;;  %779 = vmatprep.subr.bf16.mxu0 %v867_v16  ;;  %v886_v35 = vld [vmem:[#allocation7 + $0xa0] sm:$0xff]   ;;  %v887_v36 = vld [vmem:[#allocation7 + $0x78] sm:$0xff]   ;;  %v888_v37 = vld [vmem:[#allocation7 + $0xe8] sm:$0xff]  }
  0x53   :  { %v889_v38 = vld [vmem:[#allocation7 + $0x38] sm:$0xff]   ;;  %v890_v39 = vld [vmem:[#allocation7 + $0xa8] sm:$0xff]   ;;  %v891_v40 = vld [vmem:[#allocation7 + $0xf0] sm:$0xff]  }
  0x54   :  { %780 = vmatpush3.bf16.msra.mxu0 %v869_v18  ;;  %v892_v41 = vld [vmem:[#allocation7 + $0xb0] sm:$0xff]   ;;  %v893_v42 = vld [vmem:[#allocation7 + $0xf8] sm:$0xff]   ;;  %v193_v48 = vld [vmem:[%s1153_s2] sm:$0xf] }
  0x55   :  { %781 = vmatprep.subr.bf16.mxu0 %v871_v19  ;;  %v894_v43 = vld [vmem:[#allocation7 + $0xb8] sm:$0xff]   ;;  %v198_v50 = vrot.slane %v193_v48, %v197_v47  ;;  %v202_v51 = vrot.slane %v193_v48, %v201_v49  ;;  %v895_v57 = vld [vmem:[#allocation8] sm:$0xff]   ;;  %v206_v60 = vrot.slane %v193_v48, %v205_v54  ;;  %v210_v61 = vrot.slane %v193_v48, %v209_v56  ;;  %v896_v62 = vld [vmem:[#allocation8 + $0x8] sm:$0xff]  }
  0x56   :  { %v897_v2 = vld [vmem:[#allocation8 + $0x10] sm:$0xff]   ;;  %v898_v4 = vld [vmem:[#allocation8 + $0x18] sm:$0xff]   ;;  %v899_v5 = vld [vmem:[#allocation8 + $0x20] sm:$0xff]  }
  0x57   :  { %v900_v6 = vld [vmem:[#allocation8 + $0x28] sm:$0xff]   ;;  %v901_v7 = vld [vmem:[#allocation8 + $0x30] sm:$0xff]   ;;  %v902_v8 = vld [vmem:[#allocation8 + $0x38] sm:$0xff]  }
  0x58   :  { %719 = vmatmul.mubr.msk.bf16.vlgmr.msra.gmra.mrb[4].mxu1 %vm94_vm1, %v81_v12  ;;  %782 = vmatpush3.bf16.msra.mxu0 %v873_v22  ;;  %v724_v14 = vld [vmem:[%s1155_s4] ss:$0 sm:$0xff]  ;;  %s1035_s4 = smov [#allocation10]  }
  0x59   :  { %798 = vmatpush3.bf16.msra.mxu1 %v870_v20  ;;  %783 = vmatprep.subr.bf16.mxu0 %v875_v23  ;;  %s701_s29 = sshll.u32 %s1035_s4, 4  ;;  %s702_s29 = int_to_ptr.vmem [resolvable:$true] %s701_s29 }
  0x5a   :  { %799 = vmatprep.subr.bf16.mxu1 %v872_v21  ;;  %s995_s30 = scalar_lea.vmem %s702_s29, 64  ;;  %p1000_p5 = scmp.lt.s32.totalorder %s702_s29, %s702_s29 }
  0x5b   :  { %p996_p4 = scmp.ne.s32.totalorder %s702_s29, %s995_s30  ;;  %p1001_p6 = scmp.lt.s32.totalorder %s995_s30, %s995_s30 }
  0x5c   :  { %784 = vmatpush3.bf16.msra.mxu0 %v877_v26 }
  0x5d   :  { %800 = vmatpush3.bf16.msra.mxu1 %v874_v24  ;;  %785 = vmatprep.subr.bf16.mxu0 %v879_v27  ;;  %v765_v24 = vld [vmem:[%s1157_s6] ss:$0 sm:$0xff]  ;;  %p1002_p7 = por %p1001_p6, %p1000_p5 }
  0x5e   :  { %801 = vmatprep.subr.bf16.mxu1 %v876_v25 }
  0x5f   :  { %p1003_p8 = pnand %p1002_p7, %p996_p4 }
  0x60   :  { %786 = vmatpush3.bf16.msra.mxu0 %v881_v30 }
  0x61   :  { %802 = vmatpush3.bf16.msra.mxu1 %v878_v28  ;;  %787 = vmatprep.subr.bf16.mxu0 %v883_v32 }
  0x62   :  { %803 = vmatprep.subr.bf16.mxu1 %v880_v29 }
  0x64   :  { %788 = vmatpush3.bf16.msra.mxu0 %v885_v34 }
  0x65   :  { %804 = vmatpush3.bf16.msra.mxu1 %v882_v31  ;;  %789 = vmatprep.subr.bf16.mxu0 %v887_v36 }
  0x66   :  { %805 = vmatprep.subr.bf16.mxu1 %v884_v33 }
  0x68   :  { %790 = vmatpush3.bf16.msra.mxu0 %v889_v38 }
  0x69   :  { %806 = vmatpush3.bf16.msra.mxu1 %v886_v35  ;;  %828 = vmatprep.subr.bf16.mxu0 %v1032_v44 }
  0x6a   :  { %807 = vmatprep.subr.bf16.mxu1 %v888_v37 }
  0x6d   :  { %808 = vmatpush3.bf16.msra.mxu1 %v890_v39 }
  0x6e   :  { %809 = vmatprep.subr.bf16.mxu1 %v891_v40 }
  0x71   :  { %810 = vmatpush3.bf16.msra.mxu1 %v892_v41 }
  0x72   :  { %811 = vmatprep.subr.bf16.mxu1 %v893_v42 }
  0x75   :  { %812 = vmatpush3.bf16.msra.mxu1 %v894_v43 }
 0x123   :  { %v145_v52 = vpop.f32.mrb[0].mxu1 }
 0x124   :  { %vm215_vm2 = vcmp.eq.f32.partialorder %v145_v52, %v198_v50  ;;  %v147_v53 = vpop.f32.mrb[1].mxu1 }
 0x125   :  { %vm216_vm3 = vcmp.eq.f32.partialorder %v147_v53, %v202_v51  ;;  %v149_v55 = vpop.f32.mrb[2].mxu1  ;;  %vm759_vm5 = vmpackc.low %vm215_vm2, %vm215_vm2 }
 0x126   :  { %v150_v58 = vpop.f32.mrb[3].mxu1  ;;  %vm757_vm4 = vmpackc.low %vm216_vm3, %vm216_vm3 }
 0x127   :  { %758 = vmatprep.mubr.msk.bf16.mxu0 %vm757_vm4, %v1033_v59 }
 0x128   :  { %760 = vmatmul.mubr.msk.bf16.vlgmr.msra.gmra.mrb[0].mxu0 %vm759_vm5, %v1033_v59 }
 0x129   :  { %829 = vmatpush3.bf16.msra.mxu0 %v895_v57  ;;  %844 = vmatprep.mubr.msk.bf16.mxu0 %vm1034_vm10, %v1032_v44 }
 0x12a   :  { %830 = vmatprep.subr.bf16.mxu0 %v1032_v44 }
 0x12b   :  { %v186_v63 = vpop.f32.mrb[4].mxu1 }
 0x12c   :  { %vm217_vm6 = vcmp.eq.f32.partialorder %v186_v63, %v206_v60  ;;  %v188_v0 = vpop.f32.mrb[5].mxu1 }
 0x12d   :  { %vm218_vm7 = vcmp.eq.f32.partialorder %v188_v0, %v210_v61  ;;  %v190_v1 = vpop.f32.mrb[6].mxu1  ;;  %831 = vmatpush3.bf16.msra.mxu0 %v896_v62  ;;  %vm763_vm9 = vmpackc.low %vm217_vm6, %vm217_vm6 }
 0x12e   :  { %vm761_vm8 = vmpackc.low %vm218_vm7, %vm218_vm7  ;;  %v191_v3 = vpop.f32.mrb[7].mxu1  ;;  %832 = vmatprep.subr.bf16.mxu0 %v1032_v44 }
 0x12f   :  { %762 = vmatprep.mubr.msk.bf16.mxu1 %vm761_vm8, %v1033_v59 }
 0x130   :  { %764 = vmatmul.mubr.msk.bf16.vlgmr.msra.gmra.mrb[8].mxu1 %vm763_vm9, %v1033_v59 }
 0x131   :  { %833 = vmatpush3.bf16.msra.mxu0 %v897_v2 }
 0x132   :  { %834 = vmatprep.subr.bf16.mxu0 %v1032_v44 }
 0x135   :  { %835 = vmatpush3.bf16.msra.mxu0 %v898_v4 }
 0x136   :  { %836 = vmatprep.subr.bf16.mxu0 %v1032_v44 }
 0x139   :  { %837 = vmatpush3.bf16.msra.mxu0 %v899_v5 }
 0x13a   :  { %838 = vmatprep.subr.bf16.mxu0 %v1032_v44 }
 0x13d   :  { %839 = vmatpush3.bf16.msra.mxu0 %v900_v6 }
 0x13e   :  { %840 = vmatprep.subr.bf16.mxu0 %v1032_v44 }
 0x141   :  { %841 = vmatpush3.bf16.msra.mxu0 %v901_v7 }
 0x142   :  { %842 = vmatprep.subr.bf16.mxu0 %v1032_v44 }
 0x145   :  { %843 = vmatpush3.bf16.msra.mxu0 %v902_v8 }
 0x1fb   :  { %v791_v9 = vpop.f32.mrb[0].mxu0 }
 0x1fc   :  { %v792_v10 = vpop.f32.mrb[1].mxu0 }
 0x1fd   :  { %v793_v11 = vadd.f32 %v792_v10, %v791_v9  ;;  %v794_v12 = vpop.f32.mrb[2].mxu0 }
 0x1fe   :  { %v795_v13 = vpop.f32.mrb[3].mxu0 }
 0x1ff   :  { %v529_v17 = vadd.f32 %v793_v11, %v724_v14 }
 0x203   :  { %v813_v15 = vpop.f32.mrb[8].mxu1 }
 0x204   :  { %v814_v16 = vpop.f32.mrb[9].mxu1 }
 0x205   :  { %v815_v18 = vadd.f32 %v814_v16, %v813_v15  ;;  %v816_v19 = vpop.f32.mrb[10].mxu1 }
 0x206   :  { %v817_v20 = vpop.f32.mrb[11].mxu1 }
 0x207   :  { %v569_v21 = vadd.f32 %v815_v18, %v529_v17 }
 0x209   :  { %v574_v22 = vmax.f32 %v569_v21, 0.0 }
 0x20b   :  { %v575_v23 = vpack.c.bf16 %v574_v22, %v574_v22 }
 0x20d   :  { %845 = vmatmul.mubr.bf16.vlgmr.msra.gmra.mrb[4].mxu0 %v575_v23 }
 0x2e0   :  { %v681_v25 = vpop.f32.mrb[4].mxu0 }
 0x2e1   :  { %v682_v26 = vadd.f32 %v765_v24, %v681_v25  ;;  %v846_v27 = vpop.f32.mrb[5].mxu0 }
 0x2e2   :  { %v684_v28 = vpop.f32.mrb[6].mxu0 }
 0x2e3   :  { %v774_v29 = vmul.f32 -1.442695, %v682_v26  ;;  %v847_v30 = vpop.f32.mrb[7].mxu0 }
 0x2e5   :  { %903 = vpow2.f32 %v774_v29 }
 0x2ef   :  { %v904_v31 = vpop.eup %903 }
 0x2f0   :  { %v690_v32 = vadd.f32 1.0, %v904_v31 }
 0x2f2   :  { %905 = vrcp.f32 %v690_v32 }
 0x2fc   :  { %v906_v33 = vpop.eup %905 }
 0x2fd   :  { %v693_v34 = vpack.c.bf16 %v906_v33, %v906_v33 }
 0x2ff   :  { %694 = vst [vmem:[#allocation10] sm:$0xf] %v693_v34 }
 0x300   :  { %1006 = shalt.err (!%p1003_p8)
}
 0x301   :  { %s1007_s9 = scalar_lea.hbm %s1158_s7, 64 }
 0x302   :  { %p1008_p9 = scmp.ne.s32.totalorder %s1158_s7, %s1007_s9  ;;  %p1011_p10 = scmp.lt.u32.totalorder %s1007_s9, %s1158_s7 }
 0x304   :  { %p1013_p11 = pnand %p1011_p10, %p1008_p9 }
 0x306   :  { %1016 = shalt.err (!%p1013_p11)
}
 0x307   :  { %704 = dma.vmem_to_hbm [thread:$0]  %s702_s29, 64, %s1158_s7, [#allocation4]  }
 0x308   :  { %1023 = dma.done.wait [#allocation4], 64  }
 0x309   :  { %1024 = vsyncadd [#allocation4], 4294967232 }
 0x30a   :  { %708 = vsyncpa [#allocation3], 1 }
 0x30b   :  { %709 = vsyncpa [#allocation6], 1 }
 0x30c   :  { %710 = vsyncpa [#allocation9], 1 }
 0x30d   :  { %711 = vsyncpa [#allocation4], 1 }

</bundles_post_ra>
